<compile_context>
chip_gen: v6e
topology: v6e:2x2x1
jax: 0.10.0
libtpu: 0.0.40
codegen_flags: <defaults>
</compile_context>

<pallas_src>
import jax
import jax.numpy as jnp
import numpy as np
from jax import lax
from jax.experimental import pallas as pl
from jax.experimental.pallas import tpu as pltpu

# ---- problem sizes (small, consistent with the module's forward [BS, CH, LEN]) ----
BS = 2        # batch
IN_CH = 4     # input channels
OUT_CH = 8    # output channels
LEN = 128     # sequence length (lane-dense)
K_S = 5       # odd kernel size
K_R = 3.0     # wavelet kernel range
PD = K_S // 2 # "same" padding


# ---- module pieces (parameter / kernel construction, plain-JAX glue) --------------
def ricker(t):
    """Mexican-hat mother wavelet: (1 - t^2) * exp(-t^2 / 2)."""
    return (1.0 - t * t) * jnp.exp(-0.5 * t * t)


def k1d_build(k_s, k_r, in_ch, out_ch):
    # TODO(synk): k1d_build is not given in the source; assumed symmetric
    # linspace over [-k_r, k_r] broadcast to (out_ch, in_ch, k_s).
    lin = jnp.linspace(-k_r, k_r, k_s, dtype=jnp.float32)
    return jnp.broadcast_to(lin, (out_ch, in_ch, k_s))


def _param_init(key, out_ch, in_ch, l, scale, offset=0.5):
    # mirrors torch.rand(out_ch, in_ch, l) * scale + offset
    return jax.random.uniform(key, (out_ch, in_ch, l), jnp.float32) * scale + offset


# ---- Pallas kernel: single fused matmul + scalar bias ------------------------------
def fmdwcn_kernel(xcol_ref, w_ref, bias_ref, o_ref):
    # xcol_ref: (K_S*IN_CH, BS*LEN)  im2col'd, lane-aligned input   (VMEM)
    # w_ref   : (OUT_CH, K_S*IN_CH)  fused conv + linear weights    (VMEM)
    # bias_ref: (1,)                 scalar bias                    (SMEM)
    # o_ref   : (OUT_CH, BS*LEN)     lane-dense output              (VMEM)
    o_ref[...] = (jnp.dot(w_ref[...], xcol_ref[...],
                          preferred_element_type=jnp.float32)
                  + bias_ref[0]).astype(o_ref.dtype)


def fmdwcn_forward(x, params):
    w_wvl, w_lin, w_trn, w_dil, bias, k_lin = params

    # wavelet kernel construction (tiny parameter math, plain-JAX glue)
    k = ricker(k_lin)
    k = (k - w_trn) / w_dil
    k = k * w_wvl                                           # (OUT_CH, IN_CH, K_S)
    # fold the linear channel term into the center tap (broadcast over OUT_CH):
    # adding a (1, L) row to every output row == adding w_lin to tap s = PD.
    k = k.at[:, :, PD].add(jnp.broadcast_to(w_lin[:, :, 0], (OUT_CH, IN_CH)))
    w2d = k.reshape(OUT_CH, IN_CH * K_S)                    # column index = c*K_S + s

    # wrapper-side im2col (layout plumbing, ~10 KB): K_S shifted lane-aligned copies,
    # batch folded into the lane axis.
    x_pad = jnp.pad(x, ((0, 0), (0, 0), (PD, PD)))          # (BS, IN_CH, LEN + 2*PD)
    cols = jnp.stack([x_pad[:, :, s:s + LEN] for s in range(K_S)], axis=2)
    # (BS, IN_CH, K_S, LEN) -> (IN_CH, K_S, BS, LEN) -> (IN_CH*K_S, BS*LEN)
    x_col = jnp.transpose(cols, (1, 2, 0, 3)).reshape(IN_CH * K_S, BS * LEN)

    out2d = pl.pallas_call(
        fmdwcn_kernel,
        out_shape=jax.ShapeDtypeStruct((OUT_CH, BS * LEN), jnp.float32),
        in_specs=[
            pl.BlockSpec(memory_space=pltpu.MemorySpace.VMEM),   # x_col (full block)
            pl.BlockSpec(memory_space=pltpu.MemorySpace.VMEM),   # w2d   (full block)
            pl.BlockSpec(memory_space=pltpu.MemorySpace.SMEM),   # bias scalar
        ],
        out_specs=pl.BlockSpec(memory_space=pltpu.MemorySpace.VMEM),
    )(x_col, w2d, bias.reshape(1))

    # un-fold batch from the lane axis -> (BS, OUT_CH, LEN)
    return jnp.transpose(out2d.reshape(OUT_CH, BS, LEN), (1, 0, 2))


# ---- pure-JAX reference for verification -------------------------------------------
def fmdwcn_reference(x, params):
    w_wvl, w_lin, w_trn, w_dil, bias, k_lin = params
    k = ricker(k_lin)
    k = (k - w_trn) / w_dil
    k = k * w_wvl
    wvl = lax.conv_general_dilated(
        x, k, window_strides=(1,), padding=[(PD, PD)],
        dimension_numbers=("NCH", "OIH", "NCH"))            # cross-corr, like torch
    lin = jnp.sum(w_lin * x, axis=1, keepdims=True)
    return bias.reshape(1, 1, 1) + wvl + lin


if __name__ == "__main__":
    key = jax.random.PRNGKey(0)
    kx, k1, k2 = jax.random.split(key, 3)

    x = jax.random.normal(kx, (BS, IN_CH, LEN), jnp.float32)

    # deterministic parameter init, mirroring the module's __init__
    w_wvl = _param_init(k1, OUT_CH, IN_CH, 1, 1.5, 0.5)     # rand*1.5 + 0.5
    w_lin = _param_init(k2, 1, IN_CH, 1, 0.5, 0.8)          # rand*0.5 + 0.8
    w_trn = jnp.zeros((OUT_CH, IN_CH, 1), jnp.float32)      # scale=0, offset=0
    w_dil = jnp.ones((OUT_CH, IN_CH, 1), jnp.float32)       # scale=0, offset=1
    bias = jnp.zeros((1,), jnp.float32)
    k_lin = k1d_build(K_S, K_R, IN_CH, OUT_CH)

    params = (w_wvl, w_lin, w_trn, w_dil, bias, k_lin)

    out = fmdwcn_forward(x, params)
    jax.block_until_ready(out)

    ref = fmdwcn_reference(x, params)
    np.testing.assert_allclose(np.asarray(out), np.asarray(ref),
                               rtol=1e-4, atol=1e-4)

    print("KERNEL_OK")
</pallas_src>

<mosaic_0001>
module attributes {stable_mosaic.version = 11 : i64} {
  func.func @fmdwcn_kernel(%arg0: memref<20x256xf32, #tpu.memory_space<vmem>>, %arg1: memref<8x20xf32, #tpu.memory_space<vmem>>, %arg2: memref<1xf32, #tpu.memory_space<smem>>, %arg3: memref<8x256xf32, #tpu.memory_space<vmem>>) attributes {dimension_semantics = [], scalar_prefetch = 0 : i64, scratch_operands = 0 : i64, tpu.core_type = #tpu.core_type<tc>} {
    %c0 = arith.constant 0 : index
    %c0_0 = arith.constant 0 : index
    %0 = vector.load %arg1[%c0, %c0_0] : memref<8x20xf32, #tpu.memory_space<vmem>>, vector<8x20xf32>
    %c0_1 = arith.constant 0 : index
    %c0_2 = arith.constant 0 : index
    %1 = vector.load %arg0[%c0_1, %c0_2] : memref<20x256xf32, #tpu.memory_space<vmem>>, vector<20x256xf32>
    %cst = arith.constant dense<0.000000e+00> : vector<8x256xf32>
    %2 = tpu.matmul %0, %1, %cst {dimension_numbers = #tpu.dot_dimension_numbers<[1], [0], [0], [1], [0, 0, 1, 1], [], []>} : vector<8x20xf32>, vector<20x256xf32>, vector<8x256xf32> -> vector<8x256xf32>
    %c0_3 = arith.constant 0 : index
    %3 = memref.load %arg2[%c0_3] : memref<1xf32, #tpu.memory_space<smem>>
    %4 = vector.broadcast %3 : f32 to vector<8x256xf32>
    %5 = arith.addf %2, %4 : vector<8x256xf32>
    %c0_4 = arith.constant 0 : index
    %c0_5 = arith.constant 0 : index
    %6 = vector.load %arg3[%c0_4, %c0_5] : memref<8x256xf32, #tpu.memory_space<vmem>>, vector<8x256xf32>
    tpu.vector_store %arg3[%c0_4, %c0_5], %5 {strides = array<i32>} : memref<8x256xf32, #tpu.memory_space<vmem>>, vector<8x256xf32>,
    return
  }
}

</mosaic_0001>

<bundles_post_ra>
// kernel: tpu_custom_call.1
= control target key start
LH: loop header
LB: loop body
LE: loop exit
PB: predicated region body
PF: predicated region fallthrough
CT: control target
= control target key end

     0   :  { %9 = vsyncpa [#allocation4], 0  ;;  %s264_s0 = inlined_call_operand.hbm [shape: f32[20,256], index: 0, kind: input, shape index: {}]   ;;  %s265_s1 = inlined_call_operand.hbm [shape: f32[8,20], index: 1, kind: input, shape index: {}]   ;;  %s266_s2 = inlined_call_operand.<no memory space> [shape: f32[1], index: 2, kind: input, shape index: {}]   ;;  %s267_s3 = inlined_call_operand.hbm [shape: f32[8,256], index: 3, kind: output, shape index: {}]  }
   0x1   :  { %10 = vsyncpa [#allocation7], 0 }
   0x2   :  { %11 = vsyncpa [#allocation5], 0  ;;  %s226_s12 = smov [#allocation3]  }
   0x3   :  { %s17_s13 = sshll.u32 %s226_s12, 4  ;;  %s18_s13 = int_to_ptr.vmem [resolvable:$true] %s17_s13 }
   0x4   :  { %s168_s14 = scalar_lea.vmem %s18_s13, 768  ;;  %p173_p1 = scmp.lt.s32.totalorder %s18_s13, %s18_s13 }
   0x5   :  { %p169_p0 = scmp.ne.s32.totalorder %s18_s13, %s168_s14  ;;  %p174_p2 = scmp.lt.s32.totalorder %s168_s14, %s168_s14 }
   0x7   :  { %p175_p3 = por %p174_p2, %p173_p1 }
   0x9   :  { %p176_p4 = pnand %p175_p3, %p169_p0 }
   0xb   :  { %179 = shalt.err (!%p176_p4)
}
   0xc   :  { %s227_s15 = smov 256   ;;  %s228_s16 = smov 16  }
   0xd   :  { %23 = dma.hbm_to_vmem [thread:$0]  %s264_s0, 768, %s18_s13, [#allocation4], %s227_s15, %s227_s15, %s228_s16  }
   0xe   :  { %s229_s19 = smov [#allocation6]  }
   0xf   :  { %s30_s20 = sshll.u32 %s229_s19, 4  ;;  %s31_s20 = int_to_ptr.vmem [resolvable:$true] %s30_s20 }
  0x10   :  { %s188_s21 = scalar_lea.vmem %s31_s20, 128  ;;  %p193_p6 = scmp.lt.s32.totalorder %s31_s20, %s31_s20 }
  0x11   :  { %p189_p5 = scmp.ne.s32.totalorder %s31_s20, %s188_s21  ;;  %p194_p7 = scmp.lt.s32.totalorder %s188_s21, %s188_s21 }
  0x13   :  { %p195_p8 = por %p194_p7, %p193_p6 }
  0x15   :  { %p196_p9 = pnand %p195_p8, %p189_p5 }
  0x17   :  { %199 = shalt.err (!%p196_p9)
}
  0x18   :  { %33 = dma.hbm_to_vmem [thread:$0]  %s265_s1, 128, %s31_s20, [#allocation7]  }
  0x19   :  { %220 = dma.done.wait [#allocation4], 768  }
  0x1a   :  { %221 = vsyncadd [#allocation4], 4294966528 }
  0x1b   :  { %222 = dma.done.wait [#allocation7], 128  }
  0x1c   :  { %223 = vsyncadd [#allocation7], 4294967168  ;;  %v230_v0 = vmov 0.0   ;;  %vm55_vm0 = vcmask 1043456   ;;  %v48_v1 = vld [vmem:[#allocation3 + $0x28] sm:$0xf]  ;;  %v50_v8 = vstv %s266_s2 }
  0x1d   :  { %126 = vmatprep.mubr.f32.mxu0 %v230_v0  ;;  %v47_v2 = vld [vmem:[#allocation3 + $0x20] sm:$0xf]  ;;  %v46_v3 = vld [vmem:[#allocation3 + $0x18] sm:$0xff]  ;;  %151 = vmatprep.subr.msk.mxu0 %vm55_vm0, %v48_v1  ;;  %v45_v4 = vld [vmem:[#allocation3 + $0x10] sm:$0xff]  ;;  %vm51_vm1 = vcmask 162816   ;;  %s231_s24 = smov [#allocation8]  }
  0x1e   :  { %152 = vmatpush1.msk.msra.mxu0 %vm55_vm0, %v47_v2  ;;  %v44_v5 = vld [vmem:[#allocation3 + $0x8] sm:$0xff]  ;;  %v43_v6 = vld [vmem:[#allocation3] sm:$0xff]  ;;  %v42_v7 = vld [vmem:[#allocation6] sm:$0xff]  ;;  %s141_s25 = sshll.u32 %s231_s24, 4  ;;  %s142_s25 = int_to_ptr.vmem [resolvable:$true] %s141_s25 }
  0x1f   :  { %90 = vmatprep.subr.mxu0 %v46_v3  ;;  %s200_s26 = scalar_lea.vmem %s142_s25, 256  ;;  %p205_p11 = scmp.lt.s32.totalorder %s142_s25, %s142_s25 }
  0x20   :  { %91 = vmatpush1.msra.mxu0 %v45_v4  ;;  %p201_p10 = scmp.ne.s32.totalorder %s142_s25, %s200_s26  ;;  %p206_p12 = scmp.lt.s32.totalorder %s200_s26, %s200_s26 }
  0x21   :  { %92 = vmatprep.subr.mxu0 %v44_v5 }
  0x22   :  { %93 = vmatpush1.msra.mxu0 %v43_v6  ;;  %p207_p13 = por %p206_p12, %p205_p11 }
  0x23   :  { %153 = vmatmul.mubr.msk.f32.vlgmr.msra.gmra.mxu0 %vm51_vm1, %v42_v7 }
  0x24   :  { %p208_p0 = pnand %p207_p13, %p201_p10 }
  0xe3   :  { %v128_v9 = vpop.f32.mrf.mxu0 }
  0xe4   :  { %v129_v10 = vadd.f32 %v128_v9, %v50_v8 }
  0xe5   :  { %v130_v11 = vpop.f32.mrf.mxu0 }
  0xe6   :  { %133 = vst [vmem:[#allocation8] sm:$0xff] %v129_v10  ;;  %v131_v12 = vadd.f32 %v130_v11, %v50_v8 }
  0xe8   :  { %134 = vst [vmem:[#allocation8 + $0x8] sm:$0xff] %v131_v12 }
  0xe9   :  { %211 = shalt.err (!%p208_p0)
}
  0xea   :  { %144 = dma.vmem_to_hbm [thread:$0]  %s142_s25, 256, %s267_s3, [#allocation5]  }
  0xeb   :  { %224 = dma.done.wait [#allocation5], 256  }
  0xec   :  { %225 = vsyncadd [#allocation5], 4294967040 }
  0xed   :  { %148 = vsyncpa [#allocation4], 1 }
  0xee   :  { %149 = vsyncpa [#allocation7], 1 }
  0xef   :  { %150 = vsyncpa [#allocation5], 1 }

</bundles_post_ra>
